<compile_context>
chip_gen: v6e
topology: v6e:2x2x1
jax: 0.10.0
libtpu: 0.0.40
codegen_flags: <defaults>
</compile_context>

<pallas_src>
import functools

import jax
import jax.numpy as jnp
from jax.experimental import pallas as pl
from jax.experimental.pallas import tpu as pltpu

LATENT_DIM = 64
D_PAD = 128                    # lane-dense padded latent dim (multiple of 128 lanes)
TILE_M = 512                   # row tile; >=256 fills the 256-row MXU on v6e/v7x
TILE_K = 2048                  # reduction (column) tile
assert TILE_K % TILE_M == 0    # so rounding n_pad to TILE_K aligns both axes


def _pick_vmem_limit():
    # v5e/v6e have 128 MiB physical VMEM -> allow 96 MiB; v7x has 64 MiB -> cap 48 MiB.
    try:
        cap = getattr(pltpu.get_tpu_info(), "vmem_capacity_bytes", 0)
    except Exception:
        cap = 0
    if cap >= 100 * 1024 * 1024:
        return 96 * 1024 * 1024
    return 48 * 1024 * 1024


VMEM_LIMIT = _pick_vmem_limit()


def _round_up(x, m):
    return ((x + m - 1) // m) * m


def _pad2d(x, rows, cols):
    r, c = x.shape
    return jnp.pad(x, ((0, rows - r), (0, cols - c)))


# ----------------------------- Pallas kernels ------------------------------ #

def _lightgcn_layer_kernel(kcnt_ref, kmap_ref, a_ref, xk_ref, prev_sum_ref,
                           e_out_ref, sum_out_ref, acc_ref, *, inv_scale):
    """One LightGCN layer tile: e_{l+1} = A @ e_l, K-reduction over the (data-dependent)
    list of nonzero column tiles.  Also carries running_sum += e_{l+1}; on the last
    layer inv_scale = 1/(L+1) turns the running sum into the final mean."""
    i = pl.program_id(0)
    s = pl.program_id(1)

    @pl.when(s == 0)
    def _():
        acc_ref[...] = jnp.zeros_like(acc_ref)

    # Steps beyond kcount[i] are clamped to the last valid block index (no new DMA);
    # gate the MXU work so they contribute nothing.
    @pl.when(s < kcnt_ref[i])
    def _():
        acc_ref[...] += jnp.dot(a_ref[...], xk_ref[...],
                                preferred_element_type=jnp.float32)

    @pl.when(s == pl.num_programs(1) - 1)
    def _():
        e_new = acc_ref[...]
        e_out_ref[...] = e_new.astype(e_out_ref.dtype)          # bf16 next-layer input
        sum_out_ref[...] = (prev_sum_ref[...] + e_new) * inv_scale  # f32 running sum


def _ngcf_layer_kernel(kcnt_ref, kmap_ref, a_ref, xk_ref, xi_ref, rs_ref,
                       w1t_ref, b1_ref, w2t_ref, b2_ref, out_ref, acc_ref):
    """One NGCF layer tile.  With the dense normalized adjacency the per-edge message
    norm*(W1 x_j + b1 + W2 (x_j*x_i) + b2), sum-aggregated, + lin_1(x), leaky_relu
    factorizes exactly into:
        agg = (A@X) @ W1^T + ((A@X) * X) @ W2^T + rowsum(A) * (b1 + b2)
        out = leaky_relu(agg + X @ W1^T + b1)
    A@X is accumulated over nonzero column tiles; rowsum(A) is precomputed (f32)."""
    i = pl.program_id(0)
    s = pl.program_id(1)

    @pl.when(s == 0)
    def _():
        acc_ref[...] = jnp.zeros_like(acc_ref)

    @pl.when(s < kcnt_ref[i])
    def _():
        acc_ref[...] += jnp.dot(a_ref[...], xk_ref[...],
                                preferred_element_type=jnp.float32)

    @pl.when(s == pl.num_programs(1) - 1)
    def _():
        ax = acc_ref[...]                                  # f32 [tm, dp]
        x = xi_ref[...]                                    # bf16 [tm, dp]
        w1t = w1t_ref[...]                                 # bf16 [dp, dp]
        agg = (jnp.dot(ax.astype(jnp.bfloat16), w1t,
                       preferred_element_type=jnp.float32)
               + jnp.dot((ax * x.astype(jnp.float32)).astype(jnp.bfloat16),
                         w2t_ref[...], preferred_element_type=jnp.float32)
               + rs_ref[...] * (b1_ref[...] + b2_ref[...]))
        out = agg + jnp.dot(x, w1t, preferred_element_type=jnp.float32) + b1_ref[...]
        # TODO(synk): F.dropout is stochastic; evaluated in inference mode
        #             (self.training == False) where it is the identity.
        out_ref[...] = jnp.where(out >= 0, out, 0.01 * out).astype(out_ref.dtype)


# ------------------------------ pallas_call wrappers ----------------------- #

def _lightgcn_layer(a, kcount, kmap, x, prev_sum, *, tm, tk, inv_scale):
    n_pad, dp = x.shape
    nk = n_pad // tk
    grid = (n_pad // tm, nk)
    flops = 2 * n_pad * n_pad * dp
    bytes_accessed = int(a.size) * 2 + 2 * int(x.size) * 2 + 3 * n_pad * dp * 4
    return pl.pallas_call(
        functools.partial(_lightgcn_layer_kernel, inv_scale=inv_scale),
        out_shape=(jax.ShapeDtypeStruct((n_pad, dp), jnp.bfloat16),   # e_{l+1}
                   jax.ShapeDtypeStruct((n_pad, dp), jnp.float32)),   # running sum/mean
        grid_spec=pltpu.PrefetchScalarGridSpec(
            num_scalar_prefetch=2,
            grid=grid,
            in_specs=[
                # A tile: column tile chosen by the prefetched nonzero-tile list.
                pl.BlockSpec((tm, tk), lambda i, s, kc, km: (i, km[i * nk + s])),
                # X column slice (bf16), same data-dependent column tile.
                pl.BlockSpec((tk, dp), lambda i, s, kc, km: (km[i * nk + s], 0)),
                # running-sum rows (f32).
                pl.BlockSpec((tm, dp), lambda i, s, kc, km: (i, 0)),
            ],
            out_specs=[
                pl.BlockSpec((tm, dp), lambda i, s, kc, km: (i, 0)),
                pl.BlockSpec((tm, dp), lambda i, s, kc, km: (i, 0)),
            ],
            scratch_shapes=[pltpu.VMEM((tm, dp), jnp.float32)],
        ),
        compiler_params=pltpu.CompilerParams(
            dimension_semantics=("parallel", "arbitrary"),
            vmem_limit_bytes=VMEM_LIMIT),
        cost_estimate=pl.CostEstimate(flops=flops, transcendentals=0,
                                      bytes_accessed=bytes_accessed),
        # prev_sum (operand 4, counting the 2 scalar-prefetch args) aliases sum_out.
        input_output_aliases={4: 1},
    )(kcount, kmap, a, x, prev_sum)


def _ngcf_layer(a, kcount, kmap, x, rowsum, w1t, b1, w2t, b2, *, tm, tk):
    n_pad, dp = x.shape
    nk = n_pad // tk
    grid = (n_pad // tm, nk)
    flops = 2 * n_pad * n_pad * dp + 3 * 2 * n_pad * dp * dp
    bytes_accessed = (int(a.size) * 2 + 2 * int(x.size) * 2
                      + 2 * dp * dp * 2 + 2 * dp * 4 + n_pad * (dp + 1) * 4)
    return pl.pallas_call(
        _ngcf_layer_kernel,
        out_shape=jax.ShapeDtypeStruct((n_pad, dp), jnp.bfloat16),
        grid_spec=pltpu.PrefetchScalarGridSpec(
            num_scalar_prefetch=2,
            grid=grid,
            in_specs=[
                pl.BlockSpec((tm, tk), lambda i, s, kc, km: (i, km[i * nk + s])),  # A
                pl.BlockSpec((tk, dp), lambda i, s, kc, km: (km[i * nk + s], 0)),  # X col
                pl.BlockSpec((tm, dp), lambda i, s, kc, km: (i, 0)),   # X row (self)
                pl.BlockSpec((tm, 1), lambda i, s, kc, km: (i, 0)),    # rowsum(A) f32
                pl.BlockSpec((dp, dp), lambda i, s, kc, km: (0, 0)),   # W1^T (resident)
                pl.BlockSpec((1, dp), lambda i, s, kc, km: (0, 0)),    # b1   (resident)
                pl.BlockSpec((dp, dp), lambda i, s, kc, km: (0, 0)),   # W2^T (resident)
                pl.BlockSpec((1, dp), lambda i, s, kc, km: (0, 0)),    # b2   (resident)
            ],
            out_specs=pl.BlockSpec((tm, dp), lambda i, s, kc, km: (i, 0)),
            scratch_shapes=[pltpu.VMEM((tm, dp), jnp.float32)],
        ),
        compiler_params=pltpu.CompilerParams(
            dimension_semantics=("parallel", "arbitrary"),
            vmem_limit_bytes=VMEM_LIMIT),
        cost_estimate=pl.CostEstimate(flops=flops, transcendentals=0,
                                      bytes_accessed=bytes_accessed),
    )(kcount, kmap, a, x, x, rowsum, w1t, b1, w2t, b2)


@functools.partial(jax.jit, static_argnames=("num_layers", "tm", "tk"))
def lightgcn_forward(a, kcount, kmap, emb0_pad, *, num_layers, tm, tk):
    x = emb0_pad.astype(jnp.bfloat16)          # bf16 activation stream
    acc = emb0_pad                             # f32 running sum (seeded with exact emb0)
    for l in range(num_layers):
        inv_scale = 1.0 / (num_layers + 1) if l == num_layers - 1 else 1.0
        x, acc = _lightgcn_layer(a, kcount, kmap, x, acc,
                                 tm=tm, tk=tk, inv_scale=inv_scale)
    return acc                                 # == mean(emb_0 .. emb_L), padded, f32


@functools.partial(jax.jit, static_argnames=("num_layers", "tm", "tk", "d_out"))
def ngcf_forward(a, kcount, kmap, emb0_pad, rowsum, w1t, b1, w2t, b2, *,
                 num_layers, tm, tk, d_out):
    x = emb0_pad.astype(jnp.bfloat16)
    slabs = [emb0_pad[:, :d_out]]              # exact f32 emb0 slab
    for l in range(num_layers):
        x = _ngcf_layer(a, kcount, kmap, x, rowsum,
                        w1t[l], b1[l], w2t[l], b2[l], tm=tm, tk=tk)
        slabs.append(x[:, :d_out].astype(jnp.float32))
    # Per-layer slabs written lane-dense by their own kernels; concat is glue-only.
    return jnp.concatenate(slabs, axis=-1)


# ------------------------------ glue (plain JAX) --------------------------- #

@functools.partial(jax.jit, static_argnames=("num_nodes", "n_pad", "tm", "tk"))
def build_norm_adj(edge_index, *, num_nodes, n_pad, tm, tk):
    """Dense normalized adjacency (bf16), f32 rowsum, and the per-row-tile list of
    nonzero column tiles (flattened 1-D, SMEM-friendly), mirroring torch:
       deg = in-degree of targets, norm_e = deg^-0.5[from]*deg^-0.5[to],
       A[to, from] += norm_e (aggr='add').  Norms computed in f32 before the bf16 cast."""
    # TODO(synk): densifying A is O(N^2) HBM and lives outside the kernel; a truly
    #             sparse deployment would keep a tile-CSR and drive the same
    #             kmap/kcount machinery from it directly.
    from_, to_ = edge_index[0], edge_index[1]
    deg = jnp.zeros((num_nodes,), jnp.float32).at[to_].add(1.0)
    dinv = jnp.where(deg > 0, jax.lax.rsqrt(deg), 0.0)          # deg^-0.5, inf -> 0
    norm = dinv[from_] * dinv[to_]
    a = jnp.zeros((num_nodes, num_nodes), jnp.float32).at[to_, from_].add(norm)
    a = jnp.pad(a, ((0, n_pad - num_nodes), (0, n_pad - num_nodes)))
    rowsum = jnp.sum(a, axis=1, keepdims=True)                  # f32 [n_pad, 1]

    nr, kt = n_pad // tm, n_pad // tk
    nnz = (a.reshape(nr, tm, kt, tk) != 0).sum(axis=(1, 3))     # [nr, kt]
    present = nnz > 0
    kcount = present.sum(axis=1).astype(jnp.int32)              # [nr]
    # Nonzero column tiles first (ascending), zero tiles last; clamp steps past the
    # count to the last valid tile so consecutive identical block indices skip DMA.
    keys = jnp.where(present, 0, kt) + jnp.arange(kt)[None, :]
    order = jnp.argsort(keys, axis=1).astype(jnp.int32)
    step = jnp.arange(kt, dtype=jnp.int32)[None, :]
    clamped = jnp.minimum(step, jnp.maximum(kcount[:, None] - 1, 0))
    kmap = jnp.take_along_axis(order, clamped, axis=1).reshape(-1).astype(jnp.int32)
    return a.astype(jnp.bfloat16), rowsum, kcount, kmap


class RecSysGNN:
    """JAX/Pallas port of the PyTorch RecSysGNN forward pass."""

    def __init__(self, latent_dim, num_layers, num_users, num_items, model,
                 dropout=0.1, seed=0):
        assert model in ('NGCF', 'LightGCN'), 'Model must be NGCF or LightGCN'
        self.model = model
        self.num_layers = num_layers
        self.latent_dim = latent_dim
        self.num_nodes = num_users + num_items
        self.dp = _round_up(max(latent_dim, D_PAD), 128)
        self.n_pad = _round_up(self.num_nodes, max(TILE_M, TILE_K))
        n, d, dp = self.num_nodes, latent_dim, self.dp
        key = jax.random.PRNGKey(seed)

        if model == 'NGCF':
            # nn.init.xavier_uniform_(embedding.weight, gain=1)
            key, k_emb = jax.random.split(key)
            bound = (6.0 / (n + d)) ** 0.5
            self.emb0 = jax.random.uniform(k_emb, (n, d), jnp.float32, -bound, bound)
            wb = (6.0 / (d + d)) ** 0.5        # xavier_uniform_ for lin weights
            bb = 1.0 / (d ** 0.5)              # default nn.Linear bias init
            w1t, b1, w2t, b2 = [], [], [], []
            for _ in range(num_layers):
                key, k1, k2, k3, k4 = jax.random.split(key, 5)
                w1t.append(jax.random.uniform(k1, (d, d), jnp.float32, -wb, wb).T)
                b1.append(jax.random.uniform(k2, (1, d), jnp.float32, -bb, bb))
                w2t.append(jax.random.uniform(k3, (d, d), jnp.float32, -wb, wb).T)
                b2.append(jax.random.uniform(k4, (1, d), jnp.float32, -bb, bb))
            # zero-pad to lane-dense D_PAD; pad rows/cols of W are zero so padded
            # lanes of the activations stay exactly zero through every layer.
            self.w1t_pad = jnp.stack([_pad2d(w, dp, dp) for w in w1t]).astype(jnp.bfloat16)
            self.b1_pad = jnp.stack([_pad2d(b, 1, dp) for b in b1])      # f32
            self.w2t_pad = jnp.stack([_pad2d(w, dp, dp) for w in w2t]).astype(jnp.bfloat16)
            self.b2_pad = jnp.stack([_pad2d(b, 1, dp) for b in b2])      # f32
        else:
            # nn.init.normal_(embedding.weight, std=0.1)
            self.emb0 = 0.1 * jax.random.normal(key, (n, d), jnp.float32)

        self.emb0_pad = _pad2d(self.emb0, self.n_pad, dp)                # f32

    def __call__(self, edge_index):
        a_bf16, rowsum, kcount, kmap = build_norm_adj(
            edge_index, num_nodes=self.num_nodes, n_pad=self.n_pad,
            tm=TILE_M, tk=TILE_K)
        n, d = self.num_nodes, self.latent_dim
        if self.model == 'LightGCN':
            out = lightgcn_forward(a_bf16, kcount, kmap, self.emb0_pad,
                                   num_layers=self.num_layers, tm=TILE_M, tk=TILE_K)
            return self.emb0, out[:n, :d]
        out = ngcf_forward(a_bf16, kcount, kmap, self.emb0_pad, rowsum,
                           self.w1t_pad, self.b1_pad, self.w2t_pad, self.b2_pad,
                           num_layers=self.num_layers, tm=TILE_M, tk=TILE_K, d_out=d)
        return self.emb0, out[:n]

    def encode_minibatch(self, users, pos_items, neg_items, edge_index):
        emb0, out = self(edge_index)
        return (out[users], out[pos_items], out[neg_items],
                emb0[users], emb0[pos_items], emb0[neg_items])


# ------------------------- plain-JAX f32 reference ------------------------- #

def _ref_forward(model, edge_index):
    """Un-tiled f32 reference of the same math (loose bf16-tolerance check)."""
    n, d = model.num_nodes, model.latent_dim
    f, t = edge_index[0], edge_index[1]
    deg = jnp.zeros((n,), jnp.float32).at[t].add(1.0)
    dinv = jnp.where(deg > 0, jax.lax.rsqrt(deg), 0.0)
    norm = dinv[f] * dinv[t]
    a = jnp.zeros((n, n), jnp.float32).at[t, f].add(norm)
    x = model.emb0
    if model.model == 'LightGCN':
        acc = x
        for _ in range(model.num_layers):
            x = a @ x
            acc = acc + x
        return acc / (model.num_layers + 1)
    rs = jnp.sum(a, axis=1, keepdims=True)
    outs = [x]
    for l in range(model.num_layers):
        w1t = model.w1t_pad[l][:d, :d].astype(jnp.float32)
        b1 = model.b1_pad[l][:, :d]
        w2t = model.w2t_pad[l][:d, :d].astype(jnp.float32)
        b2 = model.b2_pad[l][:, :d]
        ax = a @ x
        o = ax @ w1t + (ax * x) @ w2t + rs * (b1 + b2) + x @ w1t + b1
        x = jnp.where(o >= 0, o, 0.01 * o)
        outs.append(x)
    return jnp.concatenate(outs, axis=-1)


# --------------------------------- main ------------------------------------ #

if __name__ == "__main__":
    # Big enough to exercise multi-tile grids at TILE_M=512 / TILE_K=2048:
    # n_pad = 4096 -> grid (8 row tiles x 2 K tiles), with empty and clamped K tiles.
    num_users, num_items = 1280, 1792          # N = 3072 nodes
    num_layers = 3
    num_ui_edges = 30000

    key = jax.random.PRNGKey(0)
    ku, ki = jax.random.split(key)
    u = jax.random.randint(ku, (num_ui_edges,), 0, num_users)
    it = jax.random.randint(ki, (num_ui_edges,), 0, num_items) + num_users
    # undirected bipartite graph: edges in both directions, shape [2, 2*E]
    edge_index = jnp.stack([jnp.concatenate([u, it]),
                            jnp.concatenate([it, u])], axis=0).astype(jnp.int32)

    # LightGCN
    model_lg = RecSysGNN(LATENT_DIM, num_layers, num_users, num_items,
                         model='LightGCN', seed=0)
    emb0_lg, out_lg = model_lg(edge_index)
    out_lg = jax.block_until_ready(out_lg)
    assert out_lg.shape == (num_users + num_items, LATENT_DIM)
    assert bool(jnp.all(jnp.isfinite(out_lg)))
    ref_lg = _ref_forward(model_lg, edge_index)
    err = float(jnp.max(jnp.abs(out_lg - ref_lg)))
    scale = float(jnp.max(jnp.abs(ref_lg)))
    assert err < 0.05 * scale + 1e-2, f"LightGCN mismatch: {err} vs scale {scale}"

    # NGCF
    model_ngcf = RecSysGNN(LATENT_DIM, num_layers, num_users, num_items,
                           model='NGCF', seed=0)
    emb0_ng, out_ng = model_ngcf(edge_index)
    out_ng = jax.block_until_ready(out_ng)
    assert out_ng.shape == (num_users + num_items, LATENT_DIM * (num_layers + 1))
    assert bool(jnp.all(jnp.isfinite(out_ng)))
    ref_ng = _ref_forward(model_ngcf, edge_index)
    err = float(jnp.max(jnp.abs(out_ng - ref_ng)))
    scale = float(jnp.max(jnp.abs(ref_ng)))
    assert err < 0.1 * scale + 1e-2, f"NGCF mismatch: {err} vs scale {scale}"

    # encode_minibatch (glue indexing over kernel outputs)
    users = jnp.array([0, 1, 2, 3], jnp.int32)
    pos = jnp.array([1280, 1281, 1282, 1283], jnp.int32)
    neg = jnp.array([1500, 1501, 1502, 1503], jnp.int32)
    mb = model_lg.encode_minibatch(users, pos, neg, edge_index)
    jax.block_until_ready(mb)

    print("KERNEL_OK")
</pallas_src>

<mosaic_0001>
module attributes {stable_mosaic.version = 11 : i64} {
  func.func private @main(%arg0: i32) attributes {dimension_semantics = [#tpu.dimension_semantics<core_parallel>], iteration_bounds = array<i64: 2>, tpu.core_type = #tpu.core_type<sc_scalar_subcore>, window_params = []} {
    return
  }
}

module attributes {stable_mosaic.version = 11 : i64} {
  func.func private @main(%arg0: i32) attributes {dimension_semantics = [#tpu.dimension_semantics<core_parallel>], iteration_bounds = array<i64: 2>, tpu.core_type = #tpu.core_type<sc_scalar_subcore>, window_params = []} {
    return
  }
}

</mosaic_0001>

<bundles_post_ra>
// kernel: mul.1
= control target key start
LH: loop header
LB: loop body
LE: loop exit
PB: predicated region body
PF: predicated region fallthrough
CT: control target
= control target key end

     0   :  { %s1310_s0 = inlined_call_operand.vmem [shape: f32[60000], index: 0, kind: input, shape index: {}]   ;;  %s1311_s1 = inlined_call_operand.vmem [shape: f32[60000], index: 1, kind: input, shape index: {}]   ;;  %s1312_s2 = inlined_call_operand.vmem [shape: f32[60000], index: 2, kind: output, shape index: {}]  }
   0x1   :  { %v3_v0 = vld [vmem:[%s1310_s0] sm:$0xff]  ;;  %v590_v2 = vld [vmem:[%s1310_s0 + $0x8] sm:$0xff]  ;;  %v593_v5 = vld [vmem:[%s1310_s0 + $0x10] sm:$0xff] }
   0x2   :  { %v4_v1 = vld [vmem:[%s1311_s1] sm:$0xff]  ;;  %v591_v4 = vld [vmem:[%s1311_s1 + $0x8] sm:$0xff]  ;;  %v594_v6 = vld [vmem:[%s1311_s1 + $0x10] sm:$0xff] }
   0x3   :  { %v7_v3 = vmul.f32 %v4_v1, %v3_v0  ;;  %v16_v7 = vmul.f32 %v591_v4, %v590_v2  ;;  %v26_v8 = vmul.f32 %v594_v6, %v593_v5  ;;  %v596_v9 = vld [vmem:[%s1310_s0 + $0x18] sm:$0xff]  ;;  %v599_v11 = vld [vmem:[%s1310_s0 + $0x20] sm:$0xff]  ;;  %v602_v14 = vld [vmem:[%s1310_s0 + $0x28] sm:$0xff] }
   0x4   :  { %v597_v10 = vld [vmem:[%s1311_s1 + $0x18] sm:$0xff]  ;;  %v600_v13 = vld [vmem:[%s1311_s1 + $0x20] sm:$0xff]  ;;  %v603_v15 = vld [vmem:[%s1311_s1 + $0x28] sm:$0xff] }
   0x5   :  { %9 = vst [vmem:[%s1312_s2] sm:$0xff] %v7_v3  ;;  %v36_v12 = vmul.f32 %v597_v10, %v596_v9  ;;  %592 = vst [vmem:[%s1312_s2 + $0x8] sm:$0xff] %v16_v7  ;;  %v46_v16 = vmul.f32 %v600_v13, %v599_v11  ;;  %v56_v17 = vmul.f32 %v603_v15, %v602_v14  ;;  %v605_v18 = vld [vmem:[%s1310_s0 + $0x30] sm:$0xff]  ;;  %v608_v20 = vld [vmem:[%s1310_s0 + $0x38] sm:$0xff] }
   0x6   :  { %595 = vst [vmem:[%s1312_s2 + $0x10] sm:$0xff] %v26_v8  ;;  %v606_v19 = vld [vmem:[%s1311_s1 + $0x30] sm:$0xff]  ;;  %v609_v22 = vld [vmem:[%s1311_s1 + $0x38] sm:$0xff]  ;;  %v611_v23 = vld [vmem:[%s1310_s0 + $0x40] sm:$0xff] }
   0x7   :  { %598 = vst [vmem:[%s1312_s2 + $0x18] sm:$0xff] %v36_v12  ;;  %v66_v21 = vmul.f32 %v606_v19, %v605_v18  ;;  %v612_v24 = vld [vmem:[%s1311_s1 + $0x40] sm:$0xff]  ;;  %601 = vst [vmem:[%s1312_s2 + $0x20] sm:$0xff] %v46_v16  ;;  %v76_v25 = vmul.f32 %v609_v22, %v608_v20  ;;  %v614_v27 = vld [vmem:[%s1310_s0 + $0x48] sm:$0xff] }
   0x8   :  { %604 = vst [vmem:[%s1312_s2 + $0x28] sm:$0xff] %v56_v17  ;;  %v86_v26 = vmul.f32 %v612_v24, %v611_v23  ;;  %v615_v28 = vld [vmem:[%s1311_s1 + $0x48] sm:$0xff]  ;;  %v617_v29 = vld [vmem:[%s1310_s0 + $0x50] sm:$0xff]  ;;  %v620_v32 = vld [vmem:[%s1310_s0 + $0x58] sm:$0xff] }
   0x9   :  { %607 = vst [vmem:[%s1312_s2 + $0x30] sm:$0xff] %v66_v21  ;;  %v96_v30 = vmul.f32 %v615_v28, %v614_v27  ;;  %v618_v31 = vld [vmem:[%s1311_s1 + $0x50] sm:$0xff]  ;;  %v621_v33 = vld [vmem:[%s1311_s1 + $0x58] sm:$0xff]  ;;  %610 = vst [vmem:[%s1312_s2 + $0x38] sm:$0xff] %v76_v25 }
   0xa   :  { %613 = vst [vmem:[%s1312_s2 + $0x40] sm:$0xff] %v86_v26  ;;  %v106_v34 = vmul.f32 %v618_v31, %v617_v29  ;;  %v116_v35 = vmul.f32 %v621_v33, %v620_v32  ;;  %v623_v36 = vld [vmem:[%s1310_s0 + $0x60] sm:$0xff]  ;;  %v626_v38 = vld [vmem:[%s1310_s0 + $0x68] sm:$0xff]  ;;  %v629_v41 = vld [vmem:[%s1310_s0 + $0x70] sm:$0xff] }
   0xb   :  { %v624_v37 = vld [vmem:[%s1311_s1 + $0x60] sm:$0xff]  ;;  %616 = vst [vmem:[%s1312_s2 + $0x48] sm:$0xff] %v96_v30  ;;  %v627_v40 = vld [vmem:[%s1311_s1 + $0x68] sm:$0xff]  ;;  %v630_v42 = vld [vmem:[%s1311_s1 + $0x70] sm:$0xff] }
   0xc   :  { %v126_v39 = vmul.f32 %v624_v37, %v623_v36  ;;  %619 = vst [vmem:[%s1312_s2 + $0x50] sm:$0xff] %v106_v34  ;;  %622 = vst [vmem:[%s1312_s2 + $0x58] sm:$0xff] %v116_v35  ;;  %v136_v43 = vmul.f32 %v627_v40, %v626_v38  ;;  %v146_v44 = vmul.f32 %v630_v42, %v629_v41  ;;  %v632_v45 = vld [vmem:[%s1310_s0 + $0x78] sm:$0xff]  ;;  %v635_v47 = vld [vmem:[%s1310_s0 + $0x80] sm:$0xff] }
   0xd   :  { %v633_v46 = vld [vmem:[%s1311_s1 + $0x78] sm:$0xff]  ;;  %v636_v49 = vld [vmem:[%s1311_s1 + $0x80] sm:$0xff]  ;;  %v638_v50 = vld [vmem:[%s1310_s0 + $0x88] sm:$0xff] }
   0xe   :  { %625 = vst [vmem:[%s1312_s2 + $0x60] sm:$0xff] %v126_v39  ;;  %v156_v48 = vmul.f32 %v633_v46, %v632_v45  ;;  %v639_v51 = vld [vmem:[%s1311_s1 + $0x88] sm:$0xff]  ;;  %628 = vst [vmem:[%s1312_s2 + $0x68] sm:$0xff] %v136_v43  ;;  %v166_v52 = vmul.f32 %v636_v49, %v635_v47  ;;  %v641_v54 = vld [vmem:[%s1310_s0 + $0x90] sm:$0xff] }
   0xf   :  { %631 = vst [vmem:[%s1312_s2 + $0x70] sm:$0xff] %v146_v44  ;;  %v176_v53 = vmul.f32 %v639_v51, %v638_v50  ;;  %v642_v55 = vld [vmem:[%s1311_s1 + $0x90] sm:$0xff]  ;;  %v644_v56 = vld [vmem:[%s1310_s0 + $0x98] sm:$0xff]  ;;  %v647_v59 = vld [vmem:[%s1310_s0 + $0xa0] sm:$0xff] }
  0x10   :  { %634 = vst [vmem:[%s1312_s2 + $0x78] sm:$0xff] %v156_v48  ;;  %v186_v57 = vmul.f32 %v642_v55, %v641_v54  ;;  %v645_v58 = vld [vmem:[%s1311_s1 + $0x98] sm:$0xff]  ;;  %v648_v60 = vld [vmem:[%s1311_s1 + $0xa0] sm:$0xff]  ;;  %637 = vst [vmem:[%s1312_s2 + $0x80] sm:$0xff] %v166_v52 }
  0x11   :  { %640 = vst [vmem:[%s1312_s2 + $0x88] sm:$0xff] %v176_v53  ;;  %v196_v61 = vmul.f32 %v645_v58, %v644_v56  ;;  %v206_v62 = vmul.f32 %v648_v60, %v647_v59  ;;  %v650_v63 = vld [vmem:[%s1310_s0 + $0xa8] sm:$0xff]  ;;  %v653_v1 = vld [vmem:[%s1310_s0 + $0xb0] sm:$0xff]  ;;  %v656_v4 = vld [vmem:[%s1310_s0 + $0xb8] sm:$0xff] }
  0x12   :  { %v651_v0 = vld [vmem:[%s1311_s1 + $0xa8] sm:$0xff]  ;;  %643 = vst [vmem:[%s1312_s2 + $0x90] sm:$0xff] %v186_v57  ;;  %v654_v3 = vld [vmem:[%s1311_s1 + $0xb0] sm:$0xff]  ;;  %v657_v5 = vld [vmem:[%s1311_s1 + $0xb8] sm:$0xff] }
  0x13   :  { %v216_v2 = vmul.f32 %v651_v0, %v650_v63  ;;  %646 = vst [vmem:[%s1312_s2 + $0x98] sm:$0xff] %v196_v61  ;;  %649 = vst [vmem:[%s1312_s2 + $0xa0] sm:$0xff] %v206_v62  ;;  %v226_v6 = vmul.f32 %v654_v3, %v653_v1  ;;  %v236_v7 = vmul.f32 %v657_v5, %v656_v4  ;;  %v659_v8 = vld [vmem:[%s1310_s0 + $0xc0] sm:$0xff]  ;;  %v662_v10 = vld [vmem:[%s1310_s0 + $0xc8] sm:$0xff] }
  0x14   :  { %v660_v9 = vld [vmem:[%s1311_s1 + $0xc0] sm:$0xff]  ;;  %v663_v12 = vld [vmem:[%s1311_s1 + $0xc8] sm:$0xff]  ;;  %v665_v13 = vld [vmem:[%s1310_s0 + $0xd0] sm:$0xff] }
  0x15   :  { %652 = vst [vmem:[%s1312_s2 + $0xa8] sm:$0xff] %v216_v2  ;;  %v246_v11 = vmul.f32 %v660_v9, %v659_v8  ;;  %v666_v14 = vld [vmem:[%s1311_s1 + $0xd0] sm:$0xff]  ;;  %655 = vst [vmem:[%s1312_s2 + $0xb0] sm:$0xff] %v226_v6  ;;  %v256_v15 = vmul.f32 %v663_v12, %v662_v10  ;;  %v668_v17 = vld [vmem:[%s1310_s0 + $0xd8] sm:$0xff] }
  0x16   :  { %658 = vst [vmem:[%s1312_s2 + $0xb8] sm:$0xff] %v236_v7  ;;  %v266_v16 = vmul.f32 %v666_v14, %v665_v13  ;;  %v669_v18 = vld [vmem:[%s1311_s1 + $0xd8] sm:$0xff]  ;;  %v671_v19 = vld [vmem:[%s1310_s0 + $0xe0] sm:$0xff]  ;;  %v674_v22 = vld [vmem:[%s1310_s0 + $0xe8] sm:$0xff] }
  0x17   :  { %661 = vst [vmem:[%s1312_s2 + $0xc0] sm:$0xff] %v246_v11  ;;  %v276_v20 = vmul.f32 %v669_v18, %v668_v17  ;;  %v672_v21 = vld [vmem:[%s1311_s1 + $0xe0] sm:$0xff]  ;;  %v675_v23 = vld [vmem:[%s1311_s1 + $0xe8] sm:$0xff]  ;;  %664 = vst [vmem:[%s1312_s2 + $0xc8] sm:$0xff] %v256_v15 }
  0x18   :  { %667 = vst [vmem:[%s1312_s2 + $0xd0] sm:$0xff] %v266_v16  ;;  %v286_v24 = vmul.f32 %v672_v21, %v671_v19  ;;  %v296_v25 = vmul.f32 %v675_v23, %v674_v22  ;;  %v677_v26 = vld [vmem:[%s1310_s0 + $0xf0] sm:$0xff]  ;;  %v680_v28 = vld [vmem:[%s1310_s0 + $0xf8] sm:$0xff]  ;;  %v683_v31 = vld [vmem:[%s1310_s0 + $0x100] sm:$0xff] }
  0x19   :  { %v678_v27 = vld [vmem:[%s1311_s1 + $0xf0] sm:$0xff]  ;;  %670 = vst [vmem:[%s1312_s2 + $0xd8] sm:$0xff] %v276_v20  ;;  %v681_v30 = vld [vmem:[%s1311_s1 + $0xf8] sm:$0xff]  ;;  %v684_v32 = vld [vmem:[%s1311_s1 + $0x100] sm:$0xff] }
  0x1a   :  { %v306_v29 = vmul.f32 %v678_v27, %v677_v26  ;;  %673 = vst [vmem:[%s1312_s2 + $0xe0] sm:$0xff] %v286_v24  ;;  %676 = vst [vmem:[%s1312_s2 + $0xe8] sm:$0xff] %v296_v25  ;;  %v316_v33 = vmul.f32 %v681_v30, %v680_v28  ;;  %v326_v34 = vmul.f32 %v684_v32, %v683_v31  ;;  %v686_v35 = vld [vmem:[%s1310_s0 + $0x108] sm:$0xff]  ;;  %v689_v37 = vld [vmem:[%s1310_s0 + $0x110] sm:$0xff] }
  0x1b   :  { %v687_v36 = vld [vmem:[%s1311_s1 + $0x108] sm:$0xff]  ;;  %v690_v39 = vld [vmem:[%s1311_s1 + $0x110] sm:$0xff]  ;;  %v692_v40 = vld [vmem:[%s1310_s0 + $0x118] sm:$0xff] }
  0x1c   :  { %679 = vst [vmem:[%s1312_s2 + $0xf0] sm:$0xff] %v306_v29  ;;  %v336_v38 = vmul.f32 %v687_v36, %v686_v35  ;;  %v693_v41 = vld [vmem:[%s1311_s1 + $0x118] sm:$0xff]  ;;  %682 = vst [vmem:[%s1312_s2 + $0xf8] sm:$0xff] %v316_v33  ;;  %v346_v42 = vmul.f32 %v690_v39, %v689_v37  ;;  %v695_v44 = vld [vmem:[%s1310_s0 + $0x120] sm:$0xff] }
  0x1d   :  { %685 = vst [vmem:[%s1312_s2 + $0x100] sm:$0xff] %v326_v34  ;;  %v356_v43 = vmul.f32 %v693_v41, %v692_v40  ;;  %v696_v45 = vld [vmem:[%s1311_s1 + $0x120] sm:$0xff]  ;;  %v698_v46 = vld [vmem:[%s1310_s0 + $0x128] sm:$0xff]  ;;  %v701_v49 = vld [vmem:[%s1310_s0 + $0x130] sm:$0xff] }
  0x1e   :  { %688 = vst [vmem:[%s1312_s2 + $0x108] sm:$0xff] %v336_v38  ;;  %v366_v47 = vmul.f32 %v696_v45, %v695_v44  ;;  %v699_v48 = vld [vmem:[%s1311_s1 + $0x128] sm:$0xff]  ;;  %v702_v50 = vld [vmem:[%s1311_s1 + $0x130] sm:$0xff]  ;;  %691 = vst [vmem:[%s1312_s2 + $0x110] sm:$0xff] %v346_v42 }
  0x1f   :  { %694 = vst [vmem:[%s1312_s2 + $0x118] sm:$0xff] %v356_v43  ;;  %v376_v51 = vmul.f32 %v699_v48, %v698_v46  ;;  %v386_v52 = vmul.f32 %v702_v50, %v701_v49  ;;  %v704_v53 = vld [vmem:[%s1310_s0 + $0x138] sm:$0xff]  ;;  %v707_v55 = vld [vmem:[%s1310_s0 + $0x140] sm:$0xff]  ;;  %v710_v58 = vld [vmem:[%s1310_s0 + $0x148] sm:$0xff] }
  0x20   :  { %v705_v54 = vld [vmem:[%s1311_s1 + $0x138] sm:$0xff]  ;;  %697 = vst [vmem:[%s1312_s2 + $0x120] sm:$0xff] %v366_v47  ;;  %v708_v57 = vld [vmem:[%s1311_s1 + $0x140] sm:$0xff]  ;;  %v711_v59 = vld [vmem:[%s1311_s1 + $0x148] sm:$0xff] }
  0x21   :  { %v396_v56 = vmul.f32 %v705_v54, %v704_v53  ;;  %700 = vst [vmem:[%s1312_s2 + $0x128] sm:$0xff] %v376_v51  ;;  %703 = vst [vmem:[%s1312_s2 + $0x130] sm:$0xff] %v386_v52  ;;  %v406_v60 = vmul.f32 %v708_v57, %v707_v55  ;;  %v416_v61 = vmul.f32 %v711_v59, %v710_v58  ;;  %v713_v62 = vld [vmem:[%s1310_s0 + $0x150] sm:$0xff]  ;;  %v716_v0 = vld [vmem:[%s1310_s0 + $0x158] sm:$0xff] }
  0x22   :  { %v714_v63 = vld [vmem:[%s1311_s1 + $0x150] sm:$0xff]  ;;  %v717_v2 = vld [vmem:[%s1311_s1 + $0x158] sm:$0xff]  ;;  %v719_v3 = vld [vmem:[%s1310_s0 + $0x160] sm:$0xff] }
  0x23   :  { %706 = vst [vmem:[%s1312_s2 + $0x138] sm:$0xff] %v396_v56  ;;  %v426_v1 = vmul.f32 %v714_v63, %v713_v62  ;;  %v720_v4 = vld [vmem:[%s1311_s1 + $0x160] sm:$0xff]  ;;  %709 = vst [vmem:[%s1312_s2 + $0x140] sm:$0xff] %v406_v60  ;;  %v436_v5 = vmul.f32 %v717_v2, %v716_v0  ;;  %v722_v7 = vld [vmem:[%s1310_s0 + $0x168] sm:$0xff] }
  0x24   :  { %712 = vst [vmem:[%s1312_s2 + $0x148] sm:$0xff] %v416_v61  ;;  %v446_v6 = vmul.f32 %v720_v4, %v719_v3  ;;  %v723_v8 = vld [vmem:[%s1311_s1 + $0x168] sm:$0xff]  ;;  %v725_v9 = vld [vmem:[%s1310_s0 + $0x170] sm:$0xff]  ;;  %v728_v12 = vld [vmem:[%s1310_s0 + $0x178] sm:$0xff] }
  0x25   :  { %715 = vst [vmem:[%s1312_s2 + $0x150] sm:$0xff] %v426_v1  ;;  %v456_v10 = vmul.f32 %v723_v8, %v722_v7  ;;  %v726_v11 = vld [vmem:[%s1311_s1 + $0x170] sm:$0xff]  ;;  %v729_v13 = vld [vmem:[%s1311_s1 + $0x178] sm:$0xff]  ;;  %718 = vst [vmem:[%s1312_s2 + $0x158] sm:$0xff] %v436_v5 }
  0x26   :  { %721 = vst [vmem:[%s1312_s2 + $0x160] sm:$0xff] %v446_v6  ;;  %v466_v14 = vmul.f32 %v726_v11, %v725_v9  ;;  %v476_v15 = vmul.f32 %v729_v13, %v728_v12  ;;  %v731_v16 = vld [vmem:[%s1310_s0 + $0x180] sm:$0xff]  ;;  %v734_v18 = vld [vmem:[%s1310_s0 + $0x188] sm:$0xff]  ;;  %v737_v21 = vld [vmem:[%s1310_s0 + $0x190] sm:$0xff] }
  0x27   :  { %v732_v17 = vld [vmem:[%s1311_s1 + $0x180] sm:$0xff]  ;;  %724 = vst [vmem:[%s1312_s2 + $0x168] sm:$0xff] %v456_v10  ;;  %v735_v20 = vld [vmem:[%s1311_s1 + $0x188] sm:$0xff]  ;;  %v738_v22 = vld [vmem:[%s1311_s1 + $0x190] sm:$0xff] }
  0x28   :  { %v486_v19 = vmul.f32 %v732_v17, %v731_v16  ;;  %727 = vst [vmem:[%s1312_s2 + $0x170] sm:$0xff] %v466_v14  ;;  %730 = vst [vmem:[%s1312_s2 + $0x178] sm:$0xff] %v476_v15  ;;  %v496_v23 = vmul.f32 %v735_v20, %v734_v18  ;;  %v506_v24 = vmul.f32 %v738_v22, %v737_v21  ;;  %v740_v25 = vld [vmem:[%s1310_s0 + $0x198] sm:$0xff]  ;;  %v743_v27 = vld [vmem:[%s1310_s0 + $0x1a0] sm:$0xff] }
  0x29   :  { %v741_v26 = vld [vmem:[%s1311_s1 + $0x198] sm:$0xff]  ;;  %v744_v29 = vld [vmem:[%s1311_s1 + $0x1a0] sm:$0xff]  ;;  %v746_v30 = vld [vmem:[%s1310_s0 + $0x1a8] sm:$0xff] }
  0x2a   :  { %733 = vst [vmem:[%s1312_s2 + $0x180] sm:$0xff] %v486_v19  ;;  %v516_v28 = vmul.f32 %v741_v26, %v740_v25  ;;  %v747_v31 = vld [vmem:[%s1311_s1 + $0x1a8] sm:$0xff]  ;;  %736 = vst [vmem:[%s1312_s2 + $0x188] sm:$0xff] %v496_v23  ;;  %v526_v32 = vmul.f32 %v744_v29, %v743_v27  ;;  %v749_v34 = vld [vmem:[%s1310_s0 + $0x1b0] sm:$0xff] }
  0x2b   :  { %739 = vst [vmem:[%s1312_s2 + $0x190] sm:$0xff] %v506_v24  ;;  %v536_v33 = vmul.f32 %v747_v31, %v746_v30  ;;  %v750_v35 = vld [vmem:[%s1311_s1 + $0x1b0] sm:$0xff]  ;;  %v752_v36 = vld [vmem:[%s1310_s0 + $0x1b8] sm:$0xff]  ;;  %v755_v39 = vld [vmem:[%s1310_s0 + $0x1c0] sm:$0xff] }
  0x2c   :  { %742 = vst [vmem:[%s1312_s2 + $0x198] sm:$0xff] %v516_v28  ;;  %v546_v37 = vmul.f32 %v750_v35, %v749_v34  ;;  %v753_v38 = vld [vmem:[%s1311_s1 + $0x1b8] sm:$0xff]  ;;  %v756_v40 = vld [vmem:[%s1311_s1 + $0x1c0] sm:$0xff]  ;;  %745 = vst [vmem:[%s1312_s2 + $0x1a0] sm:$0xff] %v526_v32 }
  0x2d   :  { %748 = vst [vmem:[%s1312_s2 + $0x1a8] sm:$0xff] %v536_v33  ;;  %v556_v41 = vmul.f32 %v753_v38, %v752_v36  ;;  %v566_v42 = vmul.f32 %v756_v40, %v755_v39  ;;  %v758_v43 = vld [vmem:[%s1310_s0 + $0x1c8] sm:$0xff]  ;;  %v761_v45 = vld [vmem:[%s1310_s0 + $0x1d0] sm:$0xff] }
  0x2e   :  { %v759_v44 = vld [vmem:[%s1311_s1 + $0x1c8] sm:$0xff]  ;;  %751 = vst [vmem:[%s1312_s2 + $0x1b0] sm:$0xff] %v546_v37  ;;  %v762_v47 = vld [vmem:[%s1311_s1 + $0x1d0] sm:$0xff] }
  0x2f   :  { %v576_v46 = vmul.f32 %v759_v44, %v758_v43  ;;  %754 = vst [vmem:[%s1312_s2 + $0x1b8] sm:$0xff] %v556_v41  ;;  %757 = vst [vmem:[%s1312_s2 + $0x1c0] sm:$0xff] %v566_v42  ;;  %v586_v48 = vmul.f32 %v762_v47, %v761_v45 }
  0x31   :  { %760 = vst [vmem:[%s1312_s2 + $0x1c8] sm:$0xff] %v576_v46  ;;  %763 = vst [vmem:[%s1312_s2 + $0x1d0] sm:$0xff] %v586_v48 }

</bundles_post_ra>
